<compile_context>
chip_gen: v6e
topology: v6e:2x2x1
jax: 0.10.0
libtpu: 0.0.40
codegen_flags: <defaults>
</compile_context>

<pallas_src>
import numpy as np
import jax
import jax.numpy as jnp
from jax import lax
from jax.experimental import pallas as pl
from jax.experimental.pallas import tpu as pltpu


# ----------------------------- Pallas kernel -------------------------------


def make_fused_kernel(C, H, W):
    Cd = C // 2
    HW = H * W
    HsWs = (H // 2) * (W // 2)
    M = HW // 2          # rows of theta_x after the odd .view(N, C, -1)
    K = HsWs // 2        # cols of phi_x  after pooling + .view(N, C, -1)

    def torch_cview(a, cols):
        # Row-major re-view (Cd, 2*cols) -> (2*Cd, cols), i.e. torch's
        # .view(N, C, -1) applied to a (Cd, spatial) map: every down-channel
        # row splits into two consecutive rows (first / second spatial half).
        rows = a.shape[0]
        return jnp.stack([a[:, 0:cols], a[:, cols:2 * cols]],
                         axis=1).reshape(2 * rows, cols)

    def kernel(x_eo_ref, x_nat_ref, x_quad_ref, wt_ref, bt_ref,
               wpg_ref, bpg_ref, ww_ref, bw_ref, o_ref):
        x_nat = x_nat_ref[0]                                      # (C, HW)
        x_q = x_quad_ref[0]                                       # (C, 4, HsWs)

        # theta 1x1 conv (1/sqrt(K) pre-folded into weights and bias).
        theta = (jnp.dot(wt_ref[...], x_nat,
                         preferred_element_type=jnp.float32)
                 + bt_ref[...])                                   # (Cd, HW)

        # phi|g 1x1 conv fused with the 2x2 max-pool: project each of the four
        # pool offsets of x and take a running maximum (bias added once after).
        pooled = jnp.dot(wpg_ref[...], x_q[:, 0, :],
                         preferred_element_type=jnp.float32)      # (2Cd, HsWs)
        for oi in range(1, 4):
            pooled = jnp.maximum(
                pooled,
                jnp.dot(wpg_ref[...], x_q[:, oi, :],
                        preferred_element_type=jnp.float32))
        pooled = pooled + bpg_ref[...]
        phi_p = pooled[0:Cd, :]                                   # (Cd, HsWs)
        g_p = pooled[Cd:2 * Cd, :]                                # (Cd, HsWs)

        # torch `.view(N, C, -1)` re-interpretations.
        theta_v = torch_cview(theta, M)                           # (C, M)
        phi_x = torch_cview(phi_p, K)                             # (C, K)
        g_v = torch_cview(g_p, K)                                 # (C, K) = g_x^T

        # y = theta_x @ phi_x with theta_x = theta_v^T: contract the C axis of
        # both operands directly (no materialized transpose).
        y = lax.dot_general(theta_v, phi_x, (((0,), (0,)), ((), ())),
                            preferred_element_type=jnp.float32)   # (M, K)

        # Softmax over K; normalize after the value matmul (fewer VPU mults).
        y_max = jnp.max(y, axis=-1, keepdims=True)
        e = jnp.exp(y - y_max)
        denom = jnp.sum(e, axis=-1, keepdims=True)
        z_un = lax.dot_general(e, g_v, (((1,), (1,)), ((), ())),
                               preferred_element_type=jnp.float32)  # (M, C)
        # approx=True would use the EUP vrcp; kept exact to hold a 1e-4 check.
        z = z_un * pl.reciprocal(denom, approx=False)               # (M, C)

        # Final 1x1 conv.  z.view(N, H, W, Cd).permute(0, 3, 1, 2) means the
        # first Cd columns of z feed the EVEN spatial positions and the last Cd
        # columns feed the ODD ones: write two lane-dense (C, M) slabs (the
        # wrapper re-interleaves), adding bias and the (aliased) residual.
        oe = lax.dot_general(ww_ref[...], z[:, 0:Cd], (((1,), (1,)), ((), ())),
                             preferred_element_type=jnp.float32)    # (C, M)
        oo = lax.dot_general(ww_ref[...], z[:, Cd:2 * Cd],
                             (((1,), (1,)), ((), ())),
                             preferred_element_type=jnp.float32)    # (C, M)
        bw = bw_ref[...]                                            # (C, 1)
        o_ref[0, 0] = oe + bw + x_eo_ref[0, 0]
        o_ref[0, 1] = oo + bw + x_eo_ref[0, 1]

    return kernel


# ------------------------------ wrapper -------------------------------------


@jax.jit
def nonlocal_block_pallas(x_nchw, params):
    N, C, H, W = x_nchw.shape
    assert C % 2 == 0, "NonLocalBlock needs an even channel count"
    assert H % 2 == 0 and W % 2 == 0, "2x2 max-pool needs even H and W"
    Cd = C // 2
    HW = H * W
    Hs, Ws = H // 2, W // 2
    HsWs = Hs * Ws
    M = HW // 2
    K = HsWs // 2

    scale = float(np.sqrt(K))
    # 1/sqrt(K) folded into the theta path (free at trace time).
    w_t = params["Wt"] / scale                                    # (Cd, C)
    b_t = (params["bt"] / scale)[:, None]                         # (Cd, 1)
    w_pg = jnp.concatenate([params["Wp"], params["Wg"]], axis=0)  # (2Cd, C)
    b_pg = jnp.concatenate([params["bp"], params["bg"]])[:, None]  # (2Cd, 1)
    ww = params["Ww"]                                             # (C, Cd)
    bw = params["bw"][:, None]                                    # (C, 1)

    # Wrapper-side layout plumbing (pure permutations of x, fused by XLA):
    x_nat = x_nchw.reshape(N, C, HW)                              # natural raster order
    x4 = x_nchw.reshape(N, C, Hs, 2, Ws, 2)
    x_quad = jnp.stack(                                           # (N, C, 4, HsWs)
        [x4[:, :, :, 0, :, 0], x4[:, :, :, 0, :, 1],
         x4[:, :, :, 1, :, 0], x4[:, :, :, 1, :, 1]],
        axis=2).reshape(N, C, 4, HsWs)
    # even/odd de-interleaved x for the residual (aliased to the output).
    x_eo = x_nat.reshape(N, C, M, 2).transpose(0, 3, 1, 2)        # (N, 2, C, M)

    out_eo = pl.pallas_call(
        make_fused_kernel(C, H, W),
        out_shape=jax.ShapeDtypeStruct((N, 2, C, M), jnp.float32),
        grid=(N,),
        in_specs=[
            pl.BlockSpec((1, 2, C, M), lambda n: (n, 0, 0, 0)),   # x even/odd (residual)
            pl.BlockSpec((1, C, HW), lambda n: (n, 0, 0)),        # x natural (theta)
            pl.BlockSpec((1, C, 4, HsWs), lambda n: (n, 0, 0, 0)),  # x quad (phi/g pool)
            pl.BlockSpec((Cd, C), lambda n: (0, 0)),              # Wt / sqrt(K)
            pl.BlockSpec((Cd, 1), lambda n: (0, 0)),              # bt / sqrt(K)
            pl.BlockSpec((2 * Cd, C), lambda n: (0, 0)),          # [Wp; Wg]
            pl.BlockSpec((2 * Cd, 1), lambda n: (0, 0)),          # [bp; bg]
            pl.BlockSpec((C, Cd), lambda n: (0, 0)),              # Ww
            pl.BlockSpec((C, 1), lambda n: (0, 0)),               # bw
        ],
        out_specs=pl.BlockSpec((1, 2, C, M), lambda n: (n, 0, 0, 0)),
        input_output_aliases={0: 0},                              # reuse x_eo's buffer
        compiler_params=pltpu.CompilerParams(
            dimension_semantics=("parallel",),
            vmem_limit_bytes=32 * 1024 * 1024),
    )(x_eo, x_nat, x_quad, w_t, b_t, w_pg, b_pg, ww, bw)

    # Re-interleave even/odd spatial positions: natural[:, :, 2m+r] = out_eo[:, r, :, m].
    return out_eo.transpose(0, 2, 3, 1).reshape(N, C, H, W)


# --------------------------- pure-JAX reference -----------------------------


def nonlocal_block_ref(x, params):
    """Direct transliteration of the PyTorch forward (NCHW)."""
    N, C, H, W = x.shape
    Cd = C // 2

    def conv1x1(t, w, b):
        return jnp.einsum("oc,nchw->nohw", w, t) + b[None, :, None, None]

    def maxpool2(t):
        n, c, h, wd = t.shape
        return jnp.max(t.reshape(n, c, h // 2, 2, wd // 2, 2), axis=(3, 5))

    theta_x = conv1x1(x, params["Wt"], params["bt"]).reshape(N, C, -1).transpose(0, 2, 1)
    phi_x = maxpool2(conv1x1(x, params["Wp"], params["bp"])).reshape(N, C, -1)
    y = jnp.matmul(theta_x, phi_x) / float(np.sqrt(phi_x.shape[-1]))
    g_x = maxpool2(conv1x1(x, params["Wg"], params["bg"])).reshape(N, C, -1).transpose(0, 2, 1)
    z = jnp.matmul(jax.nn.softmax(y, axis=-1), g_x)
    zmap = z.reshape(N, H, W, Cd).transpose(0, 3, 1, 2)
    return conv1x1(zmap, params["Ww"], params["bw"]) + x


# --------------------------------- main -------------------------------------


if __name__ == "__main__":
    N, C, H, W = 2, 4, 16, 16
    Cd = C // 2

    key = jax.random.PRNGKey(0)
    kx, k1, k2, k3, k4, k5, k6, k7, k8 = jax.random.split(key, 9)

    x = jax.random.normal(kx, (N, C, H, W), dtype=jnp.float32)

    # Deterministic parameter init (shapes per NonLocalBlock.__init__).
    # Note: the module initializes w.weight / w.bias to 0 (nn.init.constant_).
    params = {
        "Wt": jax.random.normal(k1, (Cd, C), dtype=jnp.float32) * 0.3,
        "bt": jax.random.normal(k2, (Cd,), dtype=jnp.float32) * 0.1,
        "Wp": jax.random.normal(k3, (Cd, C), dtype=jnp.float32) * 0.3,
        "bp": jax.random.normal(k4, (Cd,), dtype=jnp.float32) * 0.1,
        "Wg": jax.random.normal(k5, (Cd, C), dtype=jnp.float32) * 0.3,
        "bg": jax.random.normal(k6, (Cd,), dtype=jnp.float32) * 0.1,
        "Ww": jnp.zeros((C, Cd), dtype=jnp.float32),   # faithful to __init__
        "bw": jnp.zeros((C,), dtype=jnp.float32),      # faithful to __init__
    }

    # Faithful run (w == 0, as in the module's __init__).
    out = jax.block_until_ready(nonlocal_block_pallas(x, params))
    ref = nonlocal_block_ref(x, params)
    assert out.shape == (N, C, H, W)
    assert np.allclose(np.asarray(out), np.asarray(ref), atol=1e-4, rtol=1e-4)

    # Extra validation with non-zero w so the final conv path is exercised.
    params_nz = dict(params)
    params_nz["Ww"] = jax.random.normal(k7, (C, Cd), dtype=jnp.float32) * 0.3
    params_nz["bw"] = jax.random.normal(k8, (C,), dtype=jnp.float32) * 0.1
    out_nz = jax.block_until_ready(nonlocal_block_pallas(x, params_nz))
    ref_nz = nonlocal_block_ref(x, params_nz)
    assert np.allclose(np.asarray(out_nz), np.asarray(ref_nz), atol=1e-4, rtol=1e-4)

    print("KERNEL_OK")
</pallas_src>

<mosaic_0001>
module attributes {stable_mosaic.version = 11 : i64} {
  func.func @kernel(%arg0: i32, %arg1: memref<1x2x4x128xf32, #tpu.memory_space<vmem>>, %arg2: memref<1x4x256xf32, #tpu.memory_space<vmem>>, %arg3: memref<1x4x4x64xf32, #tpu.memory_space<vmem>>, %arg4: memref<2x4xf32, #tpu.memory_space<vmem>>, %arg5: memref<2x1xf32, #tpu.memory_space<vmem>>, %arg6: memref<4x4xf32, #tpu.memory_space<vmem>>, %arg7: memref<4x1xf32, #tpu.memory_space<vmem>>, %arg8: memref<4x2xf32, #tpu.memory_space<vmem>>, %arg9: memref<4x1xf32, #tpu.memory_space<vmem>>, %arg10: memref<1x2x4x128xf32, #tpu.memory_space<vmem>>) attributes {dimension_semantics = [#tpu.dimension_semantics<parallel>], iteration_bounds = array<i64: 2>, scalar_prefetch = 0 : i64, scratch_operands = 0 : i64, tpu.core_type = #tpu.core_type<tc>, window_params = [{transform_indices = @transform_0, window_bounds = array<i64: 1, 2, 4, 128>}, {transform_indices = @transform_1, window_bounds = array<i64: 1, 4, 256>}, {transform_indices = @transform_2, window_bounds = array<i64: 1, 4, 4, 64>}, {pipeline_mode = #tpu.pipeline_mode<synchronous>, transform_indices = @transform_3, window_bounds = array<i64: 2, 4>}, {pipeline_mode = #tpu.pipeline_mode<synchronous>, transform_indices = @transform_4, window_bounds = array<i64: 2, 1>}, {pipeline_mode = #tpu.pipeline_mode<synchronous>, transform_indices = @transform_5, window_bounds = array<i64: 4, 4>}, {pipeline_mode = #tpu.pipeline_mode<synchronous>, transform_indices = @transform_6, window_bounds = array<i64: 4, 1>}, {pipeline_mode = #tpu.pipeline_mode<synchronous>, transform_indices = @transform_7, window_bounds = array<i64: 4, 2>}, {pipeline_mode = #tpu.pipeline_mode<synchronous>, transform_indices = @transform_8, window_bounds = array<i64: 4, 1>}, {transform_indices = @transform_9, window_bounds = array<i64: 1, 2, 4, 128>}]} {
    %c0 = arith.constant 0 : index
    %c0_0 = arith.constant 0 : index
    %c0_1 = arith.constant 0 : index
    %0 = vector.load %arg2[%c0, %c0_0, %c0_1] : memref<1x4x256xf32, #tpu.memory_space<vmem>>, vector<1x4x256xf32>
    %1 = vector.shape_cast %0 : vector<1x4x256xf32> to vector<4x256xf32>
    %c0_2 = arith.constant 0 : index
    %c0_3 = arith.constant 0 : index
    %c0_4 = arith.constant 0 : index
    %c0_5 = arith.constant 0 : index
    %2 = vector.load %arg3[%c0_2, %c0_3, %c0_4, %c0_5] : memref<1x4x4x64xf32, #tpu.memory_space<vmem>>, vector<1x4x4x64xf32>
    %3 = vector.shape_cast %2 : vector<1x4x4x64xf32> to vector<4x4x64xf32>
    %c0_6 = arith.constant 0 : index
    %c0_7 = arith.constant 0 : index
    %4 = vector.load %arg4[%c0_6, %c0_7] : memref<2x4xf32, #tpu.memory_space<vmem>>, vector<2x4xf32>
    %cst = arith.constant dense<0.000000e+00> : vector<2x256xf32>
    %5 = tpu.matmul %4, %1, %cst {dimension_numbers = #tpu.dot_dimension_numbers<[1], [0], [0], [1], [0, 0, 1, 1], [], []>} : vector<2x4xf32>, vector<4x256xf32>, vector<2x256xf32> -> vector<2x256xf32>
    %c0_8 = arith.constant 0 : index
    %c0_9 = arith.constant 0 : index
    %6 = vector.load %arg5[%c0_8, %c0_9] : memref<2x1xf32, #tpu.memory_space<vmem>>, vector<2x1xf32>
    %7 = vector.broadcast %6 : vector<2x1xf32> to vector<2x256xf32>
    %8 = arith.addf %5, %7 : vector<2x256xf32>
    %c0_10 = arith.constant 0 : index
    %c0_11 = arith.constant 0 : index
    %9 = vector.load %arg6[%c0_10, %c0_11] : memref<4x4xf32, #tpu.memory_space<vmem>>, vector<4x4xf32>
    %10 = vector.extract_strided_slice %3 {offsets = [0, 0, 0], sizes = [4, 1, 64], strides = [1, 1, 1]} : vector<4x4x64xf32> to vector<4x1x64xf32>
    %11 = vector.shape_cast %10 : vector<4x1x64xf32> to vector<4x64xf32>
    %cst_12 = arith.constant dense<0.000000e+00> : vector<4x64xf32>
    %12 = tpu.matmul %9, %11, %cst_12 {dimension_numbers = #tpu.dot_dimension_numbers<[1], [0], [0], [1], [0, 0, 1, 1], [], []>} : vector<4x4xf32>, vector<4x64xf32>, vector<4x64xf32> -> vector<4x64xf32>
    %c0_13 = arith.constant 0 : index
    %c0_14 = arith.constant 0 : index
    %13 = vector.load %arg6[%c0_13, %c0_14] : memref<4x4xf32, #tpu.memory_space<vmem>>, vector<4x4xf32>
    %14 = vector.extract_strided_slice %3 {offsets = [0, 1, 0], sizes = [4, 1, 64], strides = [1, 1, 1]} : vector<4x4x64xf32> to vector<4x1x64xf32>
    %15 = vector.shape_cast %14 : vector<4x1x64xf32> to vector<4x64xf32>
    %cst_15 = arith.constant dense<0.000000e+00> : vector<4x64xf32>
    %16 = tpu.matmul %13, %15, %cst_15 {dimension_numbers = #tpu.dot_dimension_numbers<[1], [0], [0], [1], [0, 0, 1, 1], [], []>} : vector<4x4xf32>, vector<4x64xf32>, vector<4x64xf32> -> vector<4x64xf32>
    %17 = arith.maximumf %12, %16 : vector<4x64xf32>
    %c0_16 = arith.constant 0 : index
    %c0_17 = arith.constant 0 : index
    %18 = vector.load %arg6[%c0_16, %c0_17] : memref<4x4xf32, #tpu.memory_space<vmem>>, vector<4x4xf32>
    %19 = vector.extract_strided_slice %3 {offsets = [0, 2, 0], sizes = [4, 1, 64], strides = [1, 1, 1]} : vector<4x4x64xf32> to vector<4x1x64xf32>
    %20 = vector.shape_cast %19 : vector<4x1x64xf32> to vector<4x64xf32>
    %cst_18 = arith.constant dense<0.000000e+00> : vector<4x64xf32>
    %21 = tpu.matmul %18, %20, %cst_18 {dimension_numbers = #tpu.dot_dimension_numbers<[1], [0], [0], [1], [0, 0, 1, 1], [], []>} : vector<4x4xf32>, vector<4x64xf32>, vector<4x64xf32> -> vector<4x64xf32>
    %22 = arith.maximumf %17, %21 : vector<4x64xf32>
    %c0_19 = arith.constant 0 : index
    %c0_20 = arith.constant 0 : index
    %23 = vector.load %arg6[%c0_19, %c0_20] : memref<4x4xf32, #tpu.memory_space<vmem>>, vector<4x4xf32>
    %24 = vector.extract_strided_slice %3 {offsets = [0, 3, 0], sizes = [4, 1, 64], strides = [1, 1, 1]} : vector<4x4x64xf32> to vector<4x1x64xf32>
    %25 = vector.shape_cast %24 : vector<4x1x64xf32> to vector<4x64xf32>
    %cst_21 = arith.constant dense<0.000000e+00> : vector<4x64xf32>
    %26 = tpu.matmul %23, %25, %cst_21 {dimension_numbers = #tpu.dot_dimension_numbers<[1], [0], [0], [1], [0, 0, 1, 1], [], []>} : vector<4x4xf32>, vector<4x64xf32>, vector<4x64xf32> -> vector<4x64xf32>
    %27 = arith.maximumf %22, %26 : vector<4x64xf32>
    %c0_22 = arith.constant 0 : index
    %c0_23 = arith.constant 0 : index
    %28 = vector.load %arg7[%c0_22, %c0_23] : memref<4x1xf32, #tpu.memory_space<vmem>>, vector<4x1xf32>
    %29 = vector.broadcast %28 : vector<4x1xf32> to vector<4x64xf32>
    %30 = arith.addf %27, %29 : vector<4x64xf32>
    %31 = vector.extract_strided_slice %30 {offsets = [0, 0], sizes = [2, 64], strides = [1, 1]} : vector<4x64xf32> to vector<2x64xf32>
    %32 = vector.extract_strided_slice %30 {offsets = [2, 0], sizes = [2, 64], strides = [1, 1]} : vector<4x64xf32> to vector<2x64xf32>
    %33 = vector.extract_strided_slice %8 {offsets = [0, 0], sizes = [2, 128], strides = [1, 1]} : vector<2x256xf32> to vector<2x128xf32>
    %34 = vector.extract_strided_slice %8 {offsets = [0, 128], sizes = [2, 128], strides = [1, 1]} : vector<2x256xf32> to vector<2x128xf32>
    %35 = vector.shape_cast %33 : vector<2x128xf32> to vector<2x1x128xf32>
    %36 = vector.shape_cast %34 : vector<2x128xf32> to vector<2x1x128xf32>
    %37 = tpu.concatenate %35, %36 in 1 : vector<2x1x128xf32>, vector<2x1x128xf32> -> vector<2x2x128xf32>
    %38 = vector.shape_cast %37 : vector<2x2x128xf32> to vector<4x128xf32>
    %39 = vector.extract_strided_slice %31 {offsets = [0, 0], sizes = [2, 32], strides = [1, 1]} : vector<2x64xf32> to vector<2x32xf32>
    %40 = vector.extract_strided_slice %31 {offsets = [0, 32], sizes = [2, 32], strides = [1, 1]} : vector<2x64xf32> to vector<2x32xf32>
    %41 = vector.shape_cast %39 : vector<2x32xf32> to vector<2x1x32xf32>
    %42 = vector.shape_cast %40 : vector<2x32xf32> to vector<2x1x32xf32>
    %43 = tpu.concatenate %41, %42 in 1 : vector<2x1x32xf32>, vector<2x1x32xf32> -> vector<2x2x32xf32>
    %44 = vector.shape_cast %43 : vector<2x2x32xf32> to vector<4x32xf32>
    %45 = vector.extract_strided_slice %32 {offsets = [0, 0], sizes = [2, 32], strides = [1, 1]} : vector<2x64xf32> to vector<2x32xf32>
    %46 = vector.extract_strided_slice %32 {offsets = [0, 32], sizes = [2, 32], strides = [1, 1]} : vector<2x64xf32> to vector<2x32xf32>
    %47 = vector.shape_cast %45 : vector<2x32xf32> to vector<2x1x32xf32>
    %48 = vector.shape_cast %46 : vector<2x32xf32> to vector<2x1x32xf32>
    %49 = tpu.concatenate %47, %48 in 1 : vector<2x1x32xf32>, vector<2x1x32xf32> -> vector<2x2x32xf32>
    %50 = vector.shape_cast %49 : vector<2x2x32xf32> to vector<4x32xf32>
    %cst_24 = arith.constant dense<0.000000e+00> : vector<128x32xf32>
    %51 = tpu.matmul %38, %44, %cst_24 {dimension_numbers = #tpu.dot_dimension_numbers<[0], [0], [1], [1], [0, 1, 1, 1], [], []>} : vector<4x128xf32>, vector<4x32xf32>, vector<128x32xf32> -> vector<128x32xf32>
    %cst_25 = arith.constant dense<0xFF800000> : vector<128xf32>
    %52 = vector.multi_reduction <maximumf>, %51, %cst_25 [1] : vector<128x32xf32> to vector<128xf32>
    %53 = vector.shape_cast %52 : vector<128xf32> to vector<128x1xf32>
    %54 = vector.broadcast %53 : vector<128x1xf32> to vector<128x32xf32>
    %55 = arith.subf %51, %54 : vector<128x32xf32>
    %56 = math.exp %55 : vector<128x32xf32>
    %cst_26 = arith.constant dense<0.000000e+00> : vector<128xf32>
    %57 = vector.multi_reduction <add>, %56, %cst_26 [1] : vector<128x32xf32> to vector<128xf32>
    %58 = vector.shape_cast %57 : vector<128xf32> to vector<128x1xf32>
    %cst_27 = arith.constant dense<0.000000e+00> : vector<128x4xf32>
    %59 = tpu.matmul %56, %50, %cst_27 {dimension_numbers = #tpu.dot_dimension_numbers<[1], [1], [0], [0], [0, 0, 1, 0], [], []>} : vector<128x32xf32>, vector<4x32xf32>, vector<128x4xf32> -> vector<128x4xf32>
    %60 = tpu.reciprocal %58 : vector<128x1xf32> -> vector<128x1xf32>
    %61 = vector.broadcast %60 : vector<128x1xf32> to vector<128x4xf32>
    %62 = arith.mulf %59, %61 : vector<128x4xf32>
    %c0_28 = arith.constant 0 : index
    %c0_29 = arith.constant 0 : index
    %63 = vector.load %arg8[%c0_28, %c0_29] : memref<4x2xf32, #tpu.memory_space<vmem>>, vector<4x2xf32>
    %64 = vector.extract_strided_slice %62 {offsets = [0, 0], sizes = [128, 2], strides = [1, 1]} : vector<128x4xf32> to vector<128x2xf32>
    %cst_30 = arith.constant dense<0.000000e+00> : vector<4x128xf32>
    %65 = tpu.matmul %63, %64, %cst_30 {dimension_numbers = #tpu.dot_dimension_numbers<[1], [1], [0], [0], [0, 0, 1, 0], [], []>} : vector<4x2xf32>, vector<128x2xf32>, vector<4x128xf32> -> vector<4x128xf32>
    %c0_31 = arith.constant 0 : index
    %c0_32 = arith.constant 0 : index
    %66 = vector.load %arg8[%c0_31, %c0_32] : memref<4x2xf32, #tpu.memory_space<vmem>>, vector<4x2xf32>
    %67 = vector.extract_strided_slice %62 {offsets = [0, 2], sizes = [128, 2], strides = [1, 1]} : vector<128x4xf32> to vector<128x2xf32>
    %cst_33 = arith.constant dense<0.000000e+00> : vector<4x128xf32>
    %68 = tpu.matmul %66, %67, %cst_33 {dimension_numbers = #tpu.dot_dimension_numbers<[1], [1], [0], [0], [0, 0, 1, 0], [], []>} : vector<4x2xf32>, vector<128x2xf32>, vector<4x128xf32> -> vector<4x128xf32>
    %c0_34 = arith.constant 0 : index
    %c0_35 = arith.constant 0 : index
    %69 = vector.load %arg9[%c0_34, %c0_35] : memref<4x1xf32, #tpu.memory_space<vmem>>, vector<4x1xf32>
    %70 = vector.broadcast %69 : vector<4x1xf32> to vector<4x128xf32>
    %71 = arith.addf %65, %70 : vector<4x128xf32>
    %c0_36 = arith.constant 0 : index
    %c0_37 = arith.constant 0 : index
    %c0_38 = arith.constant 0 : index
    %c0_39 = arith.constant 0 : index
    %72 = vector.load %arg1[%c0_36, %c0_37, %c0_38, %c0_39] : memref<1x2x4x128xf32, #tpu.memory_space<vmem>>, vector<1x1x4x128xf32>
    %73 = vector.shape_cast %72 : vector<1x1x4x128xf32> to vector<4x128xf32>
    %74 = arith.addf %71, %73 : vector<4x128xf32>
    %c0_40 = arith.constant 0 : index
    %c0_41 = arith.constant 0 : index
    %c0_42 = arith.constant 0 : index
    %c0_43 = arith.constant 0 : index
    %75 = vector.load %arg10[%c0_40, %c0_41, %c0_42, %c0_43] : memref<1x2x4x128xf32, #tpu.memory_space<vmem>>, vector<1x1x4x128xf32>
    %76 = vector.shape_cast %75 : vector<1x1x4x128xf32> to vector<4x128xf32>
    %77 = vector.shape_cast %74 : vector<4x128xf32> to vector<1x1x4x128xf32>
    tpu.vector_store %arg10[%c0_40, %c0_41, %c0_42, %c0_43], %77 {strides = array<i32>} : memref<1x2x4x128xf32, #tpu.memory_space<vmem>>, vector<1x1x4x128xf32>,
    %78 = vector.broadcast %69 : vector<4x1xf32> to vector<4x128xf32>
    %79 = arith.addf %68, %78 : vector<4x128xf32>
    %c0_44 = arith.constant 0 : index
    %c1 = arith.constant 1 : index
    %c0_45 = arith.constant 0 : index
    %c0_46 = arith.constant 0 : index
    %80 = vector.load %arg1[%c0_44, %c1, %c0_45, %c0_46] : memref<1x2x4x128xf32, #tpu.memory_space<vmem>>, vector<1x1x4x128xf32>
    %81 = vector.shape_cast %80 : vector<1x1x4x128xf32> to vector<4x128xf32>
    %82 = arith.addf %79, %81 : vector<4x128xf32>
    %c0_47 = arith.constant 0 : index
    %c1_48 = arith.constant 1 : index
    %c0_49 = arith.constant 0 : index
    %c0_50 = arith.constant 0 : index
    %83 = vector.load %arg10[%c0_47, %c1_48, %c0_49, %c0_50] : memref<1x2x4x128xf32, #tpu.memory_space<vmem>>, vector<1x1x4x128xf32>
    %84 = vector.shape_cast %83 : vector<1x1x4x128xf32> to vector<4x128xf32>
    %85 = vector.shape_cast %82 : vector<4x128xf32> to vector<1x1x4x128xf32>
    tpu.vector_store %arg10[%c0_47, %c1_48, %c0_49, %c0_50], %85 {strides = array<i32>} : memref<1x2x4x128xf32, #tpu.memory_space<vmem>>, vector<1x1x4x128xf32>,
    return
  }
  func.func @transform_0(%arg0: i32) -> (i32, i32, i32, i32) {
    %c0_i32 = arith.constant 0 : i32
    %c0_i32_0 = arith.constant 0 : i32
    %c0_i32_1 = arith.constant 0 : i32
    %c0_i32_2 = arith.constant 0 : i32
    return %arg0, %c0_i32, %c0_i32_0, %c0_i32_1 : i32, i32, i32, i32
  }
  func.func @transform_1(%arg0: i32) -> (i32, i32, i32) {
    %c0_i32 = arith.constant 0 : i32
    %c0_i32_0 = arith.constant 0 : i32
    %c0_i32_1 = arith.constant 0 : i32
    return %arg0, %c0_i32, %c0_i32_0 : i32, i32, i32
  }
  func.func @transform_2(%arg0: i32) -> (i32, i32, i32, i32) {
    %c0_i32 = arith.constant 0 : i32
    %c0_i32_0 = arith.constant 0 : i32
    %c0_i32_1 = arith.constant 0 : i32
    %c0_i32_2 = arith.constant 0 : i32
    return %arg0, %c0_i32, %c0_i32_0, %c0_i32_1 : i32, i32, i32, i32
  }
  func.func @transform_3(%arg0: i32) -> (i32, i32) {
    %c0_i32 = arith.constant 0 : i32
    %c0_i32_0 = arith.constant 0 : i32
    %c0_i32_1 = arith.constant 0 : i32
    return %c0_i32, %c0_i32_0 : i32, i32
  }
  func.func @transform_4(%arg0: i32) -> (i32, i32) {
    %c0_i32 = arith.constant 0 : i32
    %c0_i32_0 = arith.constant 0 : i32
    %c0_i32_1 = arith.constant 0 : i32
    return %c0_i32, %c0_i32_0 : i32, i32
  }
  func.func @transform_5(%arg0: i32) -> (i32, i32) {
    %c0_i32 = arith.constant 0 : i32
    %c0_i32_0 = arith.constant 0 : i32
    %c0_i32_1 = arith.constant 0 : i32
    return %c0_i32, %c0_i32_0 : i32, i32
  }
  func.func @transform_6(%arg0: i32) -> (i32, i32) {
    %c0_i32 = arith.constant 0 : i32
    %c0_i32_0 = arith.constant 0 : i32
    %c0_i32_1 = arith.constant 0 : i32
    return %c0_i32, %c0_i32_0 : i32, i32
  }
  func.func @transform_7(%arg0: i32) -> (i32, i32) {
    %c0_i32 = arith.constant 0 : i32
    %c0_i32_0 = arith.constant 0 : i32
    %c0_i32_1 = arith.constant 0 : i32
    return %c0_i32, %c0_i32_0 : i32, i32
  }
  func.func @transform_8(%arg0: i32) -> (i32, i32) {
    %c0_i32 = arith.constant 0 : i32
    %c0_i32_0 = arith.constant 0 : i32
    %c0_i32_1 = arith.constant 0 : i32
    return %c0_i32, %c0_i32_0 : i32, i32
  }
  func.func @transform_9(%arg0: i32) -> (i32, i32, i32, i32) {
    %c0_i32 = arith.constant 0 : i32
    %c0_i32_0 = arith.constant 0 : i32
    %c0_i32_1 = arith.constant 0 : i32
    %c0_i32_2 = arith.constant 0 : i32
    return %arg0, %c0_i32, %c0_i32_0, %c0_i32_1 : i32, i32, i32, i32
  }
}

</mosaic_0001>

<bundles_post_ra>
// kernel: nonlocal_block_pallas.1
= control target key start
LH: loop header
LB: loop body
LE: loop exit
PB: predicated region body
PF: predicated region fallthrough
CT: control target
= control target key end

     0   :  { %s2367_s30 = smov 0   ;;  %s2696_s0 = inlined_call_operand.vmem [shape: f32[2,2,4,128], index: 0, kind: input, shape index: {}, may-alias: {0,9}]   ;;  %s2697_s1 = inlined_call_operand.vmem [shape: f32[2,4,256], index: 1, kind: input, shape index: {}]   ;;  %s2698_s2 = inlined_call_operand.vmem [shape: f32[2,4,4,64], index: 2, kind: input, shape index: {}]   ;;  %s2699_s3 = inlined_call_operand.vmem [shape: f32[2,4], index: 3, kind: input, shape index: {}]   ;;  %s2700_s4 = inlined_call_operand.vmem [shape: f32[2,1], index: 4, kind: input, shape index: {}]   ;;  %s2701_s5 = inlined_call_operand.vmem [shape: f32[4,4], index: 5, kind: input, shape index: {}]   ;;  %s2702_s6 = inlined_call_operand.vmem [shape: f32[4,1], index: 6, kind: input, shape index: {}]   ;;  %s2703_s7 = inlined_call_operand.vmem [shape: f32[4,2], index: 7, kind: input, shape index: {}]   ;;  %s2704_s8 = inlined_call_operand.vmem [shape: f32[4,1], index: 8, kind: input, shape index: {}]   ;;  %s2705_s9 = inlined_call_operand.vmem [shape: f32[2,2,4,128], index: 9, kind: output, shape index: {}, may-alias: {0,9}]  }
   0x1 LB: > { %s1902_s10 = sadd.s32 4294967295, %s2308_s30   ;;  %p1906_p0 = scmp.ge.s32.totalorder %s2308_s30, 1  ;;  %s2308_s30 = sphi %s2367_s30, %s19_s30  }
   0x2   : > { %p307_p1 = scmp.lt.s32.totalorder %s2308_s30, 3 }
   0x4   : > { %p308_p2 = pnand %p1906_p0, %p307_p1 }
   0x5   : > { %p353_p3 = scmp.lt.s32.totalorder (!%p308_p2), %s1902_s10, 1  ;;  %s2315_s27 = smov (!%p308_p2), 96  }
   0x6   : > { %311 = sbr.rel (%p308_p2) target bundleno = 1339 (0x53b), region = 56  ;;  %s2316_s28 = smov (!%p308_p2), 126  }
   0xb   : > { %v2310_v0 = vmov 0.0   ;;  %s2707_s10 = smov (!%p353_p3, %s1902_s10), 1  ;;  %vm2311_vm0 = vmmov 0   ;;  %v793_v1 = vld [vmem:[%s2702_s6] sm:$0xf]  ;;  %v2312_v2 = vmov 0   ;;  %v804_v38 = vlaneseq }
   0xc   : > { %460 = vmatprep.mubr.f32.mxu0 %v2310_v0  ;;  %2078 = vmatprep.subr.mxu1 %v2310_v0  ;;  %s2382_s13 = sshll.u32 %s2707_s10, 3  ;;  %s2000_s14 = sshll.u32 %s2707_s10, 4  ;;  %vm391_vm1 = vcmask 1043456   ;;  %vm387_vm2 = vcmask 31744   ;;  %vm473_vm3 = vcmask 1041409   ;;  %vm476_vm4 = vcmask 1042434  }
   0xd   : > { %2080 = vmatprep.mubr.msk.f32.mxu1 %vm2311_vm0, %v2310_v0  ;;  %2235 = vset.pattern.permute.xlu0 %v2312_v2  ;;  %s362_s17 = scalar_lea.vmem %s2697_s1, %s2382_s13  ;;  %s367_s20 = scalar_lea.vmem %s2698_s2, %s2000_s14  ;;  %v379_v3 = vld [vmem:[%s2700_s4] sm:$0x3]  ;;  %vm479_vm5 = vcmask 1043459   ;;  %v2313_v36 = vmov 1966171168   ;;  %v805_v41 = vshrl.u32 %v804_v38, 7 }
   0xe   : > { %2236 = vset.pattern.permute.xlu1 %v2312_v2  ;;  %796 = vperm.xlu0 %2235, %v793_v1   ;;  %v373_v4 = vld [vmem:[%s362_s17] sm:$0xff]  ;;  %v376_v8 = vld [vmem:[%s367_s20 + $0x8] sm:$0xf]  ;;  %v377_v9 = vld [vmem:[%s367_s20 + $0xc] sm:$0xf]  ;;  %v802_v37 = vunpack.c.l.s4 %v2313_v36  ;;  %vm858_vm6 = vcmask 1040384   ;;  %s357_s16 = scalar_lea.vmem %s2696_s0, %s2382_s13  ;;  %s372_s19 = scalar_lea.vmem %s2705_s9, %s2382_s13 }
   0xf   : > { %v375_v5 = vld [vmem:[%s367_s20 + $0x4] sm:$0xf]  ;;  %v374_v6 = vld [vmem:[%s367_s20] sm:$0xf]  ;;  %v386_v7 = vcombine.high %v373_v4, %v373_v4  ;;  %v475_v13 = vrot.slane %v376_v8, 6  ;;  %v478_v14 = vrot.slane %v377_v9, 5 }
  0x10   : > { %v472_v10 = vrot.slane %v375_v5, 7  ;;  %v556_v11 = vrot.slane %v374_v6, 1  ;;  %v378_v12 = vld [vmem:[%s2699_s3] sm:$0x3]  ;;  %v635_v15 = vrot.slane %v374_v6, 2  ;;  %v714_v16 = vrot.slane %v374_v6, 3 }
  0x11   : > { %1915 = vmatprep.subr.msk.mxu0 %vm391_vm1, %v386_v7  ;;  %v558_v19 = vrot.slane %v376_v8, 7  ;;  %v560_v20 = vrot.slane %v377_v9, 6  ;;  %v467_v22 = vld [vmem:[%s2701_s5] sm:$0xf]  ;;  %v636_v23 = vrot.slane %v375_v5, 1  ;;  %v639_v24 = vrot.slane %v377_v9, 7 }
  0x12   : > { %382 = vperm.xlu0 %2235, %v379_v3   ;;  %v474_v17 = vsel %vm473_vm3, %v472_v10, %v374_v6  ;;  %v557_v18 = vsel %vm473_vm3, %v375_v5, %v556_v11  ;;  %1916 = vmatpush1.msk.msra.mxu0 %vm391_vm1, %v373_v4  ;;  %v715_v25 = vrot.slane %v375_v5, 2  ;;  %v717_v28 = vrot.slane %v376_v8, 1 }
  0x13   : > { %v477_v21 = vsel %vm476_vm4, %v475_v13, %v474_v17  ;;  %1917 = vmatmul.mubr.msk.f32.vlgmr.msra.gmra.mxu0 %vm387_vm2, %v378_v12  ;;  %2083 = vmatprep.subr.mxu0 %v2310_v0  ;;  %v559_v27 = vsel %vm476_vm4, %v558_v19, %v557_v18  ;;  %v637_v30 = vsel %vm473_vm3, %v636_v23, %v635_v15  ;;  %v803_v40 = vunpack.c.0.s8 %v802_v37 }
  0x14   : > { %v480_v26 = vsel %vm479_vm5, %v478_v14, %v477_v21  ;;  %v561_v29 = vsel %vm479_vm5, %v560_v20, %v559_v27  ;;  %2085 = vmatprep.mubr.msk.f32.mxu0 %vm2311_vm0, %v2310_v0  ;;  %v716_v31 = vsel %vm473_vm3, %v715_v25, %v714_v16  ;;  %v638_v32 = vsel %vm476_vm4, %v376_v8, %v637_v30 }
  0x15   : > { %2079 = vmatpush3.msk.msra.mxu1 %vm391_vm1, %v480_v26  ;;  %2084 = vmatpush3.msk.msra.mxu0 %vm391_vm1, %v561_v29  ;;  %v718_v33 = vsel %vm476_vm4, %v717_v28, %v716_v31  ;;  %v640_v34 = vsel %vm479_vm5, %v639_v24, %v638_v32  ;;  %v806_v42 = vsub.s32 %v803_v40, %v805_v41  ;;  %v2314_v52 = vmov 1983009808  }
  0x16   : > { %2081 = vmatmul.mubr.msk.f32.vlgmr.msra.gmra.mxu1 %vm387_vm2, %v467_v22  ;;  %2088 = vmatprep.subr.mxu1 %v2310_v0  ;;  %v719_v35 = vsel %vm479_vm5, %v377_v9, %v718_v33  ;;  %v926_v53 = vunpack.c.l.s4 %v2314_v52  ;;  %v850_v55 = vsub.s32 0, %v805_v41  ;;  %vm1170_vm7 = vcmask 261120  }
  0x17   : > { %2090 = vmatprep.mubr.msk.f32.mxu1 %vm2311_vm0, %v2310_v0  ;;  %2086 = vmatmul.mubr.msk.f32.vlgmr.msra.gmra.mxu0 %vm387_vm2, %v467_v22  ;;  %vm1559_vm8 = vcmask 15360  }
  0x18   : > { %2089 = vmatpush3.msk.msra.mxu1 %vm391_vm1, %v640_v34  ;;  %2093 = vmatprep.subr.mxu0 %v2310_v0  ;;  %v927_v2 = vunpack.c.0.s8 %v926_v53 }
  0x19   : > { %2095 = vmatprep.mubr.msk.f32.mxu0 %vm2311_vm0, %v2310_v0  ;;  %2094 = vmatpush3.msk.msra.mxu0 %vm391_vm1, %v719_v35 }
  0x1a   : > { %2091 = vmatmul.mubr.msk.f32.vlgmr.msra.gmra.mxu1 %vm387_vm2, %v467_v22  ;;  %v930_v11 = vsub.s32 %v927_v2, %v805_v41 }
  0x1b   : > { %2096 = vmatmul.mubr.msk.f32.vlgmr.msra.gmra.mxu0 %vm387_vm2, %v467_v22 }
  0x89   : > { %v797_v39 = vpop.permute.xlu0 %796 }
  0x8d   : > { %v383_v43 = vpop.permute.xlu0 %382 }
  0xd3   : > { %v462_v44 = vpop.f32.mrf.mxu0 }
  0xd4   : > { %v463_v45 = vadd.f32 %v462_v44, %v383_v43 }
  0xd5   : > { %v464_v46 = vpop.f32.mrf.mxu0 }
  0xd6   : > { %v552_v47 = vpop.f32.mrf.mxu1  ;;  %v807_v48 = vrot.slane %v463_v45, %v806_v42  ;;  %v465_v49 = vadd.f32 %v464_v46, %v383_v43 }
  0xd7   : > { %v630_v51 = vpop.f32.mrf.mxu0 }
  0xd8   : > { %v2082_v50 = vpop.f32.mrf.mxu1  ;;  %v832_v54 = vrot.slane %v465_v49, %v806_v42  ;;  %v634_v56 = vmax.f32 %v552_v47, %v630_v51  ;;  %v808_v59 = vcombine.high %v807_v48, %v807_v48  ;;  %v815_v7 = vrot.slane %v807_v48, %v806_v42 }
  0xd9   : > { %v2087_v57 = vpop.f32.mrf.mxu0 }
  0xda   : > { %v709_v58 = vpop.f32.mrf.mxu1  ;;  %v833_v60 = vcombine.high %v832_v54, %v832_v54  ;;  %v840_v61 = vrot.slane %v832_v54, %v806_v42  ;;  %v822_v8 = vrot.slane %v808_v59, %v806_v42 }
  0xdb   : > { %v713_v62 = vmax.f32 %v634_v56, %v709_v58  ;;  %v788_v63 = vpop.f32.mrf.mxu0 }
  0xdc   : > { %v2092_v1 = vpop.f32.mrf.mxu1  ;;  %v847_v3 = vrot.slane %v833_v60, %v806_v42  ;;  %v851_v4 = vrot.slane %v840_v61, %v850_v55 }
  0xdd   : > { %v792_v5 = vmax.f32 %v713_v62, %v788_v63  ;;  %v2097_v6 = vpop.f32.mrf.mxu0 }
  0xde   : > { %v855_v9 = vrot.slane %v847_v3, %v850_v55  ;;  %v859_v13 = vsel %vm858_vm6, %v815_v7, %v851_v4 }
  0xdf   : > { %v799_v10 = vadd.f32 %v797_v39, %v792_v5 }
  0xe0   : > { %v860_v14 = vsel %vm858_vm6, %v822_v8, %v855_v9 }
  0xe1   : > { %v868_v12 = vrot.slane %v799_v10, %v806_v42  ;;  %v924_v15 = vcombine.low %v859_v13, %v860_v14 }
  0xe3   : > { %v869_v16 = vcombine.high %v868_v12, %v868_v12  ;;  %v876_v17 = vrot.slane %v868_v12, %v806_v42  ;;  %v931_v18 = vrot.slane %v924_v15, %v930_v11 }
  0xe5   : > { %v889_v19 = vrot.slane %v876_v17, %v850_v55  ;;  %v883_v20 = vrot.slane %v869_v16, %v806_v42  ;;  %933 = vxpose.xlu0.b32.start.end [1/1] (short) %v931_v18, 128  ;;  %v902_v22 = vcombine.high %v876_v17, %v876_v17 }
  0xe7   : > { %894 = vrot.lane.b32.xlu1 %v889_v19, %s2315_s27  ;;  %v893_v21 = vrot.slane %v883_v20, %v850_v55  ;;  %v909_v23 = vrot.slane %v902_v22, %v850_v55  ;;  %v903_v24 = vcombine.high %v883_v20, %v883_v20 }
  0xe9   : > { %v913_v25 = vrot.slane %v903_v24, %v850_v55 }
  0xeb   : > { %896 = vrot.lane.b32.xlu1 %v893_v21, %s2315_s27 }
  0xef   : > { %914 = vrot.lane.b32.xlu1 %v909_v23, %s2315_s27 }
  0xf3   : > { %916 = vrot.lane.b32.xlu1 %v913_v25, %s2315_s27 }
 0x159   : > { %v895_v26 = vpop.permute.xlu1 %894 }
 0x15a   : > { %v900_v28 = vsel %vm858_vm6, %v876_v17, %v895_v26 }
 0x15d   : > { %v897_v27 = vpop.permute.xlu1 %896 }
 0x15e   : > { %v901_v29 = vsel %vm858_vm6, %v883_v20, %v897_v27 }
 0x15f   : > { %v967_v30 = vcombine.low %v900_v28, %v901_v29 }
 0x161   : > { %v974_v31 = vrot.slane %v967_v30, %v930_v11  ;;  %v915_v32 = vpop.permute.xlu1 %914  ;;  %v949_v33 = vpop.trf.xlu0 }
 0x162   : > { %2100 = vmatprep.mubr.msk.f32.mxu1 %vm387_vm2, %v949_v33  ;;  %v920_v35 = vsel %vm858_vm6, %v902_v22, %v915_v32 }
 0x163   : > { %2098 = vmatprep.subr.msk.mxu1 %vm391_vm1, %v974_v31 }
 0x164   : > { %2099 = vmatpush3.msk.msra.mxu1 %vm391_vm1, %v974_v31 }
 0x165   : > { %v917_v34 = vpop.permute.xlu1 %916  ;;  %2150 = vmatprep.subr.mxu1 %v2310_v0  ;;  %v950_v37 = vpop.trf.xlu0 }
 0x166   : > { %v921_v36 = vsel %vm858_vm6, %v903_v24, %v917_v34  ;;  %2101 = vmatmul.mubr.msk.f32.vlgmr.msra.gmra.mxu1 %vm387_vm2, %v950_v37 }
 0x167   : > { %v1317_v38 = vcombine.low %v920_v35, %v921_v36 }
 0x169   : > { %v1324_v39 = vrot.slane %v1317_v38, %v930_v11  ;;  %v951_v40 = vpop.trf.xlu0 }
 0x16a   : > { %2103 = vmatprep.mubr.msk.f32.mxu1 %vm387_vm2, %v951_v40 }
 0x16b   : > { %2124 = vmatprep.subr.msk.mxu0 %vm1170_vm7, %v1324_v39 }
 0x16c   : > { %2125 = vmatpush3.xpose.msk.msra.mxu0 %vm1170_vm7, %v1324_v39 }
 0x16d   : > { %2185 = vmatprep.subr.mxu0 %v2310_v0  ;;  %v952_v41 = vpop.trf.xlu0 }
 0x16e   : > { %2104 = vmatmul.mubr.msk.f32.gmra.mxu1 %vm387_vm2, %v952_v41 }
 0x171   : > { %v953_v42 = vpop.trf.xlu0 }
 0x172   : > { %2106 = vmatprep.mubr.msk.f32.mxu1 %vm387_vm2, %v953_v42 }
 0x175   : > { %v954_v43 = vpop.trf.xlu0 }
 0x176   : > { %2107 = vmatmul.mubr.msk.f32.gmra.mxu1 %vm387_vm2, %v954_v43 }
 0x179   : > { %v955_v44 = vpop.trf.xlu0 }
 0x17a   : > { %2109 = vmatprep.mubr.msk.f32.mxu1 %vm387_vm2, %v955_v44 }
 0x17d   : > { %v956_v45 = vpop.trf.xlu0 }
 0x17e   : > { %2110 = vmatmul.mubr.msk.f32.gmra.mxu1 %vm387_vm2, %v956_v45 }
 0x181   : > { %v957_v46 = vpop.trf.xlu0 }
 0x182   : > { %2112 = vmatprep.mubr.msk.f32.mxu1 %vm387_vm2, %v957_v46 }
 0x185   : > { %v958_v47 = vpop.trf.xlu0 }
 0x186   : > { %2113 = vmatmul.mubr.msk.f32.gmra.mxu1 %vm387_vm2, %v958_v47 }
 0x189   : > { %v959_v48 = vpop.trf.xlu0 }
 0x18a   : > { %2115 = vmatprep.mubr.msk.f32.mxu1 %vm387_vm2, %v959_v48 }
 0x18d   : > { %v960_v49 = vpop.trf.xlu0 }
 0x18e   : > { %2116 = vmatmul.mubr.msk.f32.gmra.mxu1 %vm387_vm2, %v960_v49 }
 0x191   : > { %v961_v50 = vpop.trf.xlu0 }
 0x192   : > { %2118 = vmatprep.mubr.msk.f32.mxu1 %vm387_vm2, %v961_v50 }
 0x195   : > { %v962_v51 = vpop.trf.xlu0 }
 0x196   : > { %2119 = vmatmul.mubr.msk.f32.gmra.mxu1 %vm387_vm2, %v962_v51 }
 0x199   : > { %v963_v52 = vpop.trf.xlu0 }
 0x19a   : > { %2121 = vmatprep.mubr.msk.f32.mxu1 %vm387_vm2, %v963_v52 }
 0x19d   : > { %v964_v53 = vpop.trf.xlu0 }
 0x19e   : > { %2122 = vmatmul.mubr.msk.f32.gmra.mxu1 %vm387_vm2, %v964_v53 }
 0x19f   : > { %2182 = vmatprep.mubr.msk.f32.mxu1 %vm2311_vm0, %v2310_v0 }
 0x226   : > { %v2102_v54 = vpop.f32.mrf.mxu1 }
 0x227   : > { %v1174_v55 = vsel %vm1170_vm7, %v2102_v54, -inf }
 0x228   : > { %1175 = vmax.xlane.f32.xlu0 %v1174_v55  ;;  %v1091_v56 = vpop.f32.mrf.mxu1 }
 0x229   : > { %v1171_v57 = vsel %vm1170_vm7, %v1091_v56, -inf }
 0x22a   : > { %1172 = vmax.xlane.f32.xlu1 %v1171_v57 }
 0x22e   : > { %v2105_v58 = vpop.f32.mrf.mxu1 }
 0x22f   : > { %v1180_v59 = vsel %vm1170_vm7, %v2105_v58, -inf }
 0x230   : > { %1181 = vmax.xlane.f32.xlu1 %v1180_v59  ;;  %v1101_v60 = vpop.f32.mrf.mxu1 }
 0x231   : > { %v1177_v61 = vsel %vm1170_vm7, %v1101_v60, -inf }
 0x234   : > { %1178 = vmax.xlane.f32.xlu1 %v1177_v61 }
 0x236   : > { %v2108_v62 = vpop.f32.mrf.mxu1 }
 0x237   : > { %v1186_v63 = vsel %vm1170_vm7, %v2108_v62, -inf }
 0x238   : > { %1187 = vmax.xlane.f32.xlu1 %v1186_v63  ;;  %v1111_v1 = vpop.f32.mrf.mxu1 }
 0x239   : > { %v1183_v2 = vsel %vm1170_vm7, %v1111_v1, -inf }
 0x23c   : > { %1184 = vmax.xlane.f32.xlu1 %v1183_v2 }
 0x23e   : > { %v2468_v3 = vpop.f32.mrf.mxu1 }
 0x23f   : > { %v1192_v4 = vsel %vm1170_vm7, %v2468_v3, -inf }
 0x240   : > { %1193 = vmax.xlane.f32.xlu1 %v1192_v4  ;;  %v1121_v5 = vpop.f32.mrf.mxu1 }
 0x241   : > { %v1189_v6 = vsel %vm1170_vm7, %v1121_v5, -inf }
 0x244   : > { %1190 = vmax.xlane.f32.xlu1 %v1189_v6 }
 0x246   : > { %v2473_v7 = vpop.f32.mrf.mxu1 }
 0x247   : > { %v1198_v8 = vsel %vm1170_vm7, %v2473_v7, -inf }
 0x248   : > { %1199 = vmax.xlane.f32.xlu1 %v1198_v8  ;;  %v2477_v9 = vpop.f32.mrf.mxu1 }
 0x249   : > { %v1195_v10 = vsel %vm1170_vm7, %v2477_v9, -inf }
 0x24c   : > { %1196 = vmax.xlane.f32.xlu1 %v1195_v10 }
 0x24e   : > { %v2481_v11 = vpop.f32.mrf.mxu1 }
 0x24f   : > { %v1204_v12 = vsel %vm1170_vm7, %v2481_v11, -inf }
 0x250   : > { %1205 = vmax.xlane.f32.xlu1 %v1204_v12  ;;  %v2485_v13 = vpop.f32.mrf.mxu1 }
 0x251   : > { %v1201_v14 = vsel %vm1170_vm7, %v2485_v13, -inf }
 0x254   : > { %1202 = vmax.xlane.f32.xlu1 %v1201_v14 }
 0x256   : > { %v2489_v15 = vpop.f32.mrf.mxu1 }
 0x257   : > { %v1210_v18 = vsel %vm1170_vm7, %v2489_v15, -inf }
 0x258   : > { %v2491_v16 = vpop.f32.mrf.mxu1 }
 0x259   : > { %v1207_v17 = vsel %vm1170_vm7, %v2491_v16, -inf }
 0x25a   : > { %1208 = vmax.xlane.f32.xlu1 %v1207_v17 }
 0x25e   : > { %1211 = vmax.xlane.f32.xlu1 %v1210_v18  ;;  %v2497_v19 = vpop.f32.mrf.mxu1 }
 0x25f   : > { %v1216_v21 = vsel %vm1170_vm7, %v2497_v19, -inf }
 0x260   : > { %v2499_v20 = vpop.f32.mrf.mxu1 }
 0x261   : > { %v1213_v22 = vsel %vm1170_vm7, %v2499_v20, -inf }
 0x262   : > { %1217 = vmax.xlane.f32.xlu1 %v1216_v21  ;;  %1214 = vmax.xlane.f32.xlu0 %v1213_v22 }
 0x2b1   : > { %v1176_v23 = vpop.xlane.xlu0 %1175 }
 0x2b2   : > { %v1220_v24 = vsub.f32 %v2102_v54, %v1176_v23 }
 0x2b3   : > { %v1173_v25 = vpop.xlane.xlu1 %1172 }
 0x2b4   : > { %v1219_v26 = vsub.f32 %v1091_v56, %v1173_v25  ;;  %v1237_v27 = vmul.f32 1.442695, %v1220_v24 }
 0x2b6   : > { %v1235_v28 = vmul.f32 1.442695, %v1219_v26 }
 0x2b8   : > { %2238 = vpow2.f32 %v1235_v28 }
 0x2b9   : > { %2240 = vpow2.f32 %v1237_v27  ;;  %v1182_v29 = vpop.xlane.xlu1 %1181 }
 0x2ba   : > { %v1222_v30 = vsub.f32 %v2105_v58, %v1182_v29 }
 0x2bc   : > { %v1241_v33 = vmul.f32 1.442695, %v1222_v30 }
 0x2bd   : > { %v1179_v31 = vpop.xlane.xlu1 %1178 }
 0x2be   : > { %v1221_v32 = vsub.f32 %v1101_v60, %v1179_v31 }
 0x2c0   : > { %v1239_v34 = vmul.f32 1.442695, %v1221_v32 }
 0x2c1   : > { %v1188_v35 = vpop.xlane.xlu1 %1187 }
 0x2c2   : > { %2242 = vpow2.f32 %v1239_v34  ;;  %v1224_v36 = vsub.f32 %v2108_v62, %v1188_v35 }
 0x2c3   : > { %2244 = vpow2.f32 %v1241_v33 }
 0x2c4   : > { %v1245_v41 = vmul.f32 1.442695, %v1224_v36 }
 0x2c5   : > { %v2505_v37 = vpop.eup %2238  ;;  %v1185_v38 = vpop.xlane.xlu1 %1184 }
 0x2c6   : > { %v2507_v39 = vpop.eup %2240  ;;  %v1223_v40 = vsub.f32 %v1111_v1, %v1185_v38  ;;  %2126 = vmatprep.mubr.msk.f32.mxu0 %vm1170_vm7, %v2505_v37 }
 0x2c7   : > { %2127 = vmatmul.mubr.msk.f32.vlgmr.msra.gmra.mxu0 %vm1170_vm7, %v2507_v39 }
 0x2c8   : > { %v1243_v42 = vmul.f32 1.442695, %v1223_v40  ;;  %v1270_v40 = vsel %vm1170_vm7, %v2507_v39, 0.0 }
 0x2c9   : > { %v1194_v43 = vpop.xlane.xlu1 %1193 }
 0x2ca   : > { %2246 = vpow2.f32 %v1243_v42  ;;  %v1226_v44 = vsub.f32 %v2468_v3, %v1194_v43 }
 0x2cb   : > { %2248 = vpow2.f32 %v1245_v41  ;;  %v1267_v41 = vsel %vm1170_vm7, %v2505_v37, 0.0 }
 0x2cc   : > { %v1249_v48 = vmul.f32 1.442695, %v1226_v44 }
 0x2cd   : > { %v1191_v45 = vpop.xlane.xlu1 %1190 }
 0x2ce   : > { %v1225_v46 = vsub.f32 %v1121_v5, %v1191_v45 }
 0x2cf   : > { %v2514_v47 = vpop.eup %2242 }
 0x2d0   : > { %v2516_v49 = vpop.eup %2244  ;;  %v1247_v50 = vmul.f32 1.442695, %v1225_v46  ;;  %2129 = vmatprep.mubr.msk.f32.mxu0 %vm1170_vm7, %v2514_v47  ;;  %v1273_v38 = vsel %vm1170_vm7, %v2514_v47, 0.0 }
 0x2d1   : > { %v1200_v51 = vpop.xlane.xlu1 %1199  ;;  %2130 = vmatmul.mubr.msk.f32.gmra.mxu0 %vm1170_vm7, %v2516_v49  ;;  %v1276_v36 = vsel %vm1170_vm7, %v2516_v49, 0.0 }
 0x2d2   : > { %2250 = vpow2.f32 %v1247_v50  ;;  %v1228_v52 = vsub.f32 %v2473_v7, %v1200_v51 }
 0x2d3   : > { %2252 = vpow2.f32 %v1249_v48 }
 0x2d4   : > { %v1253_v56 = vmul.f32 1.442695, %v1228_v52 }
 0x2d5   : > { %v1197_v53 = vpop.xlane.xlu1 %1196 }
 0x2d6   : > { %v1227_v54 = vsub.f32 %v2477_v9, %v1197_v53 }
 0x2d7   : > { %v2524_v55 = vpop.eup %2246 }
 0x2d8   : > { %v2526_v57 = vpop.eup %2248  ;;  %v1251_v58 = vmul.f32 1.442695, %v1227_v54  ;;  %2132 = vmatprep.mubr.msk.f32.mxu0 %vm1170_vm7, %v2524_v55  ;;  %v1279_v35 = vsel %vm1170_vm7, %v2524_v55, 0.0 }
 0x2d9   : > { %v1206_v59 = vpop.xlane.xlu1 %1205  ;;  %2133 = vmatmul.mubr.msk.f32.gmra.mxu0 %vm1170_vm7, %v2526_v57  ;;  %v1282_v34 = vsel %vm1170_vm7, %v2526_v57, 0.0 }
 0x2da   : > { %2254 = vpow2.f32 %v1251_v58  ;;  %v1230_v60 = vsub.f32 %v2481_v11, %v1206_v59 }
 0x2db   : > { %2256 = vpow2.f32 %v1253_v56 }
 0x2dc   : > { %v1257_v1 = vmul.f32 1.442695, %v1230_v60 }
 0x2dd   : > { %v1203_v61 = vpop.xlane.xlu1 %1202 }
 0x2de   : > { %v1229_v62 = vsub.f32 %v2485_v13, %v1203_v61 }
 0x2df   : > { %v2251_v63 = vpop.eup %2250 }
 0x2e0   : > { %v2253_v2 = vpop.eup %2252  ;;  %v1255_v3 = vmul.f32 1.442695, %v1229_v62  ;;  %2135 = vmatprep.mubr.msk.f32.mxu0 %vm1170_vm7, %v2251_v63  ;;  %v1285_v33 = vsel %vm1170_vm7, %v2251_v63, 0.0 }
 0x2e1   : > { %2136 = vmatmul.mubr.msk.f32.gmra.mxu0 %vm1170_vm7, %v2253_v2  ;;  %v1288_v32 = vsel %vm1170_vm7, %v2253_v2, 0.0 }
 0x2e2   : > { %2258 = vpow2.f32 %v1255_v3 }
 0x2e3   : > { %2260 = vpow2.f32 %v1257_v1  ;;  %v1209_v4 = vpop.xlane.xlu1 %1208 }
 0x2e4   : > { %v1231_v5 = vsub.f32 %v2491_v16, %v1209_v4 }
 0x2e6   : > { %v1259_v6 = vmul.f32 1.442695, %v1231_v5 }
 0x2e7   : > { %v2255_v7 = vpop.eup %2254  ;;  %v1212_v8 = vpop.xlane.xlu1 %1211 }
 0x2e8   : > { %v2257_v9 = vpop.eup %2256  ;;  %2262 = vpow2.f32 %v1259_v6  ;;  %v1232_v10 = vsub.f32 %v2489_v15, %v1212_v8  ;;  %2138 = vmatprep.mubr.msk.f32.mxu0 %vm1170_vm7, %v2255_v7  ;;  %v1291_v31 = vsel %vm1170_vm7, %v2255_v7, 0.0 }
 0x2e9   : > { %2139 = vmatmul.mubr.msk.f32.gmra.mxu0 %vm1170_vm7, %v2257_v9  ;;  %v1294_v30 = vsel %vm1170_vm7, %v2257_v9, 0.0 }
 0x2ea   : > { %v1261_v11 = vmul.f32 1.442695, %v1232_v10 }
 0x2eb   : > { %v1218_v12 = vpop.xlane.xlu1 %1217  ;;  %v1215_v13 = vpop.xlane.xlu0 %1214 }
 0x2ec   : > { %2264 = vpow2.f32 %v1261_v11  ;;  %v1234_v14 = vsub.f32 %v2497_v19, %v1218_v12  ;;  %v1233_v17 = vsub.f32 %v2499_v20, %v1215_v13 }
 0x2ee   : > { %v1265_v16 = vmul.f32 1.442695, %v1234_v14  ;;  %v1263_v18 = vmul.f32 1.442695, %v1233_v17 }
 0x2ef   : > { %v2259_v21 = vpop.eup %2258 }
 0x2f0   : > { %v2261_v22 = vpop.eup %2260  ;;  %2266 = vpow2.f32 %v1265_v16  ;;  %2141 = vmatprep.mubr.msk.f32.mxu0 %vm1170_vm7, %v2259_v21  ;;  %v1297_v29 = vsel %vm1170_vm7, %v2259_v21, 0.0 }
 0x2f1   : > { %2268 = vpow2.f32 %v1263_v18  ;;  %2142 = vmatmul.mubr.msk.f32.gmra.mxu0 %vm1170_vm7, %v2261_v22  ;;  %v1300_v28 = vsel %vm1170_vm7, %v2261_v22, 0.0 }
 0x2f5   : > { %v2263_v15 = vpop.eup %2262 }
 0x2f6   : > { %2144 = vmatprep.mubr.msk.f32.mxu0 %vm1170_vm7, %v2263_v15  ;;  %v1303_v27 = vsel %vm1170_vm7, %v2263_v15, 0.0 }
 0x2f9   : > { %v2265_v23 = vpop.eup %2264 }
 0x2fa   : > { %2145 = vmatmul.mubr.msk.f32.gmra.mxu0 %vm1170_vm7, %v2265_v23  ;;  %v1306_v26 = vsel %vm1170_vm7, %v2265_v23, 0.0 }
 0x2fd   : > { %v2267_v24 = vpop.eup %2266 }
 0x2fe   : > { %v2269_v19 = vpop.eup %2268  ;;  %v1312_v20 = vsel %vm1170_vm7, %v2267_v24, 0.0 }
 0x2ff   : > { %2147 = vmatprep.mubr.msk.f32.mxu0 %vm1170_vm7, %v2269_v19  ;;  %1313 = vadd.xlane.f32.xlu0 %v1312_v20  ;;  %v1309_v25 = vsel %vm1170_vm7, %v2269_v19, 0.0 }
 0x300   : > { %2148 = vmatmul.mubr.msk.f32.gmra.mxu0 %vm1170_vm7, %v2267_v24  ;;  %1310 = vadd.xlane.f32.xlu1 %v1309_v25 }
 0x301   : > { %2217 = vmatprep.mubr.msk.f32.mxu0 %vm2311_vm0, %v2310_v0 }
 0x303   : > { %1307 = vadd.xlane.f32.xlu0 %v1306_v26 }
 0x304   : > { %1304 = vadd.xlane.f32.xlu1 %v1303_v27 }
 0x307   : > { %1301 = vadd.xlane.f32.xlu0 %v1300_v28 }
 0x308   : > { %1298 = vadd.xlane.f32.xlu1 %v1297_v29 }
 0x30b   : > { %1295 = vadd.xlane.f32.xlu0 %v1294_v30 }
 0x30c   : > { %1292 = vadd.xlane.f32.xlu1 %v1291_v31 }
 0x30f   : > { %1289 = vadd.xlane.f32.xlu0 %v1288_v32 }
 0x310   : > { %1286 = vadd.xlane.f32.xlu1 %v1285_v33 }
 0x313   : > { %1283 = vadd.xlane.f32.xlu0 %v1282_v34 }
 0x314   : > { %1280 = vadd.xlane.f32.xlu1 %v1279_v35 }
 0x317   : > { %1277 = vadd.xlane.f32.xlu0 %v1276_v36 }
 0x318   : > { %1274 = vadd.xlane.f32.xlu1 %v1273_v38 }
 0x31b   : > { %1271 = vadd.xlane.f32.xlu0 %v1270_v40 }
 0x31c   : > { %1268 = vadd.xlane.f32.xlu1 %v1267_v41 }
 0x387   : > { %v2572_v42 = vpop.f32.mrf.mxu0 }
 0x388   : > { %v1314_v48 = vpop.xlane.xlu0 %1313 }
 0x389   : > { %v2574_v43 = vpop.f32.mrf.mxu0  ;;  %v1311_v45 = vpop.xlane.xlu1 %1310  ;;  %2270 = vrcp.f32 %v1314_v48 }
 0x38a   : > { %2272 = vrcp.f32 %v1311_v45 }
 0x38c   : > { %v1308_v39 = vpop.xlane.xlu0 %1307 }
 0x38d   : > { %v1305_v49 = vpop.xlane.xlu1 %1304 }
 0x38e   : > { %2274 = vrcp.f32 %v1305_v49 }
 0x38f   : > { %2276 = vrcp.f32 %v1308_v39 }
 0x390   : > { %v1302_v53 = vpop.xlane.xlu0 %1301 }
 0x391   : > { %v2576_v44 = vpop.f32.mrf.mxu0  ;;  %v1299_v37 = vpop.xlane.xlu1 %1298 }
 0x392   : > { %2278 = vrcp.f32 %v1299_v37 }
 0x393   : > { %v2578_v46 = vpop.f32.mrf.mxu0  ;;  %2280 = vrcp.f32 %v1302_v53 }
 0x394   : > { %v1296_v57 = vpop.xlane.xlu0 %1295 }
 0x395   : > { %v1293_v55 = vpop.xlane.xlu1 %1292 }
 0x396   : > { %2282 = vrcp.f32 %v1293_v55  ;;  %v2271_v2 = vpop.eup %2270 }
 0x397   : > { %2284 = vrcp.f32 %v1296_v57  ;;  %v2273_v6 = vpop.eup %2272 }
 0x398   : > { %v1290_v61 = vpop.xlane.xlu0 %1289 }
 0x399   : > { %v2580_v47 = vpop.f32.mrf.mxu0  ;;  %v1287_v59 = vpop.xlane.xlu1 %1286 }
 0x39a   : > { %2286 = vrcp.f32 %v1287_v59 }
 0x39b   : > { %v2582_v50 = vpop.f32.mrf.mxu0  ;;  %2288 = vrcp.f32 %v1290_v61  ;;  %v2275_v9 = vpop.eup %2274  ;;  %v1681_v61 = vld [vmem:[%s357_s16] sm:$0xf] }
 0x39c   : > { %v1284_v3 = vpop.xlane.xlu0 %1283  ;;  %v2277_v12 = vpop.eup %2276 }
 0x39d   : > { %v1281_v1 = vpop.xlane.xlu1 %1280 }
 0x39e   : > { %2290 = vrcp.f32 %v1281_v1 }
 0x39f   : > { %2292 = vrcp.f32 %v1284_v3  ;;  %v2279_v17 = vpop.eup %2278 }
 0x3a0   : > { %v1278_v13 = vpop.xlane.xlu0 %1277  ;;  %v2281_v18 = vpop.eup %2280 }
 0x3a1   : > { %v2584_v51 = vpop.f32.mrf.mxu0  ;;  %v1275_v10 = vpop.xlane.xlu1 %1274 }
 0x3a2   : > { %2294 = vrcp.f32 %v1275_v10 }
 0x3a3   : > { %v2586_v52 = vpop.f32.mrf.mxu0  ;;  %2296 = vrcp.f32 %v1278_v13  ;;  %v2283_v15 = vpop.eup %2282 }
 0x3a4   : > { %v1272_v23 = vpop.xlane.xlu0 %1271  ;;  %v2285_v24 = vpop.eup %2284 }
 0x3a5   : > { %v1269_v21 = vpop.xlane.xlu1 %1268 }
 0x3a6   : > { %2298 = vrcp.f32 %v1269_v21 }
 0x3a7   : > { %v2287_v20 = vpop.eup %2286  ;;  %2300 = vrcp.f32 %v1272_v23 }
 0x3a8   : > { %v2289_v26 = vpop.eup %2288  ;;  %v1542_v27 = vmul.f32 %v2287_v20, %v2586_v52 }
 0x3a9   : > { %v2588_v54 = vpop.f32.mrf.mxu0  ;;  %v1543_v29 = vmul.f32 %v2289_v26, %v2584_v51 }
 0x3aa   : > { %v1545_v25 = vmul.f32 %v2285_v24, %v2588_v54 }
 0x3ab   : > { %v1481_v56 = vpop.f32.mrf.mxu0  ;;  %v2291_v28 = vpop.eup %2290 }
 0x3ac   : > { %v1544_v19 = vmul.f32 %v2283_v15, %v1481_v56  ;;  %v2293_v30 = vpop.eup %2292  ;;  %v1540_v31 = vmul.f32 %v2291_v28, %v2582_v50 }
 0x3ad   : > { %v1541_v33 = vmul.f32 %v2293_v30, %v2580_v47 }
 0x3af   : > { %v2295_v32 = vpop.eup %2294 }
 0x3b0   : > { %v2297_v34 = vpop.eup %2296  ;;  %v1538_v35 = vmul.f32 %v2295_v32, %v2578_v46 }
 0x3b1   : > { %v2143_v58 = vpop.f32.mrf.mxu0  ;;  %v1539_v38 = vmul.f32 %v2297_v34, %v2576_v44 }
 0x3b2   : > { %v1547_v22 = vmul.f32 %v2281_v18, %v2143_v58 }
 0x3b3   : > { %v1491_v60 = vpop.f32.mrf.mxu0  ;;  %v2299_v36 = vpop.eup %2298 }
 0x3b4   : > { %v1546_v16 = vmul.f32 %v2279_v17, %v1491_v60  ;;  %v2301_v40 = vpop.eup %2300  ;;  %v1536_v41 = vmul.f32 %v2299_v36, %v2574_v43  ;;  %v1552_v43 = vld [vmem:[%s2703_s7] sm:$0xf] }
 0x3b5   : > { %v1537_v45 = vmul.f32 %v2301_v40, %v2572_v42  ;;  %v1553_v42 = vld [vmem:[%s2704_s8] sm:$0xf] }
 0x3ba   : > { %v2146_v62 = vpop.f32.mrf.mxu0 }
 0x3bb   : > { %v1549_v14 = vmul.f32 %v2277_v12, %v2146_v62 }
 0x3bc   : > { %v1501_v63 = vpop.f32.mrf.mxu0 }
 0x3bd   : > { %v1548_v11 = vmul.f32 %v2275_v9, %v1501_v63 }
 0x3c0   : > { %v2149_v4 = vpop.f32.mrf.mxu0 }
 0x3c1   : > { %v1551_v5 = vmul.f32 %v2271_v2, %v2149_v4 }
 0x3c2   : > { %v1511_v7 = vpop.f32.mrf.mxu0 }
 0x3c3   : > { %v1550_v8 = vmul.f32 %v2273_v6, %v1511_v7  ;;  %1714 = vrot.lane.b32.xlu0 %v1551_v5, %s2316_s28  ;;  %2151 = vmatpush3.xpose.msk.msra.mxu1 %vm1559_vm8, %v1551_v5 }
 0x3c4   : > { %2152 = vmatprep.subr.mxu1 %v2310_v0 }
 0x3c5   : > { %1712 = vrot.lane.b32.xlu1 %v1550_v8, %s2316_s28 }
 0x3c7   : > { %1708 = vrot.lane.b32.xlu0 %v1548_v11, %s2316_s28  ;;  %2153 = vmatpush3.xpose.msk.msra.mxu1 %vm1559_vm8, %v1550_v8 }
 0x3c8   : > { %2154 = vmatprep.subr.mxu1 %v2310_v0 }
 0x3c9   : > { %1710 = vrot.lane.b32.xlu1 %v1549_v14, %s2316_s28 }
 0x3cb   : > { %1704 = vrot.lane.b32.xlu0 %v1546_v16, %s2316_s28  ;;  %2155 = vmatpush3.xpose.msk.msra.mxu1 %vm1559_vm8, %v1549_v14 }
 0x3cc   : > { %2156 = vmatprep.subr.mxu1 %v2310_v0 }
 0x3cd   : > { %1706 = vrot.lane.b32.xlu1 %v1547_v22, %s2316_s28 }
 0x3cf   : > { %1700 = vrot.lane.b32.xlu0 %v1544_v19, %s2316_s28  ;;  %2157 = vmatpush3.xpose.msk.msra.mxu1 %vm1559_vm8, %v1548_v11 }
 0x3d0   : > { %2158 = vmatprep.subr.mxu1 %v2310_v0 }
 0x3d1   : > { %1702 = vrot.lane.b32.xlu1 %v1545_v25, %s2316_s28 }
 0x3d3   : > { %1696 = vrot.lane.b32.xlu0 %v1542_v27, %s2316_s28  ;;  %2159 = vmatpush3.xpose.msk.msra.mxu1 %vm1559_vm8, %v1547_v22 }
 0x3d4   : > { %2160 = vmatprep.subr.mxu1 %v2310_v0 }
 0x3d5   : > { %1698 = vrot.lane.b32.xlu1 %v1543_v29, %s2316_s28 }
 0x3d7   : > { %1692 = vrot.lane.b32.xlu0 %v1540_v31, %s2316_s28  ;;  %2161 = vmatpush3.xpose.msk.msra.mxu1 %vm1559_vm8, %v1546_v16 }
 0x3d8   : > { %2162 = vmatprep.subr.mxu1 %v2310_v0 }
 0x3d9   : > { %1694 = vrot.lane.b32.xlu1 %v1541_v33, %s2316_s28 }
 0x3db   : > { %1688 = vrot.lane.b32.xlu0 %v1538_v35, %s2316_s28  ;;  %2163 = vmatpush3.xpose.msk.msra.mxu1 %vm1559_vm8, %v1545_v25 }
 0x3dc   : > { %2164 = vmatprep.subr.mxu1 %v2310_v0 }
 0x3dd   : > { %1690 = vrot.lane.b32.xlu1 %v1539_v38, %s2316_s28 }
 0x3df   : > { %1684 = vrot.lane.b32.xlu0 %v1536_v41, %s2316_s28  ;;  %2165 = vmatpush3.xpose.msk.msra.mxu1 %vm1559_vm8, %v1544_v19 }
 0x3e0   : > { %2166 = vmatprep.subr.mxu1 %v2310_v0 }
 0x3e1   : > { %1686 = vrot.lane.b32.xlu1 %v1537_v45, %s2316_s28 }
 0x3e3   : > { %2167 = vmatpush3.xpose.msk.msra.mxu1 %vm1559_vm8, %v1543_v29 }
 0x3e4   : > { %2168 = vmatprep.subr.mxu1 %v2310_v0 }
 0x3e5   : > { %1556 = vperm.xlu1 %2236, %v1553_v42  }
 0x3e7   : > { %2169 = vmatpush3.xpose.msk.msra.mxu1 %vm1559_vm8, %v1542_v27 }
 0x3e8   : > { %2170 = vmatprep.subr.mxu1 %v2310_v0 }
 0x3eb   : > { %2171 = vmatpush3.xpose.msk.msra.mxu1 %vm1559_vm8, %v1541_v33 }
 0x3ec   : > { %2172 = vmatprep.subr.mxu1 %v2310_v0 }
 0x3ef   : > { %2173 = vmatpush3.xpose.msk.msra.mxu1 %vm1559_vm8, %v1540_v31 }
 0x3f0   : > { %2174 = vmatprep.subr.mxu1 %v2310_v0 }
 0x3f3   : > { %2175 = vmatpush3.xpose.msk.msra.mxu1 %vm1559_vm8, %v1539_v38 }
 0x3f4   : > { %2176 = vmatprep.subr.mxu1 %v2310_v0 }
 0x3f7   : > { %2177 = vmatpush3.xpose.msk.msra.mxu1 %vm1559_vm8, %v1538_v35 }
 0x3f8   : > { %2178 = vmatprep.subr.mxu1 %v2310_v0 }
 0x3fb   : > { %2179 = vmatpush3.xpose.msk.msra.mxu1 %vm1559_vm8, %v1537_v45 }
 0x3fc   : > { %2180 = vmatprep.subr.mxu1 %v2310_v0 }
 0x3ff   : > { %2181 = vmatpush3.xpose.msk.msra.mxu1 %vm1559_vm8, %v1536_v41 }
 0x402   : > { %2183 = vmatmul.mubr.msk.f32.vlgmr.msra.gmra.mxu1 %vm1559_vm8, %v1552_v43 }
 0x435   : > { %v1715_v44 = vpop.permute.xlu0 %1714 }
 0x436   : > { %2186 = vmatpush3.xpose.msk.msra.mxu0 %vm1559_vm8, %v1715_v44 }
 0x437   : > { %v1713_v46 = vpop.permute.xlu1 %1712  ;;  %2187 = vmatprep.subr.mxu0 %v2310_v0 }
 0x439   : > { %v1709_v47 = vpop.permute.xlu0 %1708 }
 0x43a   : > { %2188 = vmatpush3.xpose.msk.msra.mxu0 %vm1559_vm8, %v1713_v46 }
 0x43b   : > { %2189 = vmatprep.subr.mxu0 %v2310_v0  ;;  %v1711_v48 = vpop.permute.xlu1 %1710 }
 0x43d   : > { %v1705_v50 = vpop.permute.xlu0 %1704 }
 0x43e   : > { %2190 = vmatpush3.xpose.msk.msra.mxu0 %vm1559_vm8, %v1711_v48 }
 0x43f   : > { %2191 = vmatprep.subr.mxu0 %v2310_v0  ;;  %v1707_v49 = vpop.permute.xlu1 %1706 }
 0x441   : > { %v1701_v51 = vpop.permute.xlu0 %1700 }
 0x442   : > { %2192 = vmatpush3.xpose.msk.msra.mxu0 %vm1559_vm8, %v1709_v47 }
 0x443   : > { %2193 = vmatprep.subr.mxu0 %v2310_v0  ;;  %v1703_v39 = vpop.permute.xlu1 %1702 }
 0x445   : > { %v1697_v52 = vpop.permute.xlu0 %1696 }
 0x446   : > { %2194 = vmatpush3.xpose.msk.msra.mxu0 %vm1559_vm8, %v1707_v49 }
 0x447   : > { %2195 = vmatprep.subr.mxu0 %v2310_v0  ;;  %v1699_v37 = vpop.permute.xlu1 %1698 }
 0x449   : > { %v1693_v54 = vpop.permute.xlu0 %1692 }
 0x44a   : > { %2196 = vmatpush3.xpose.msk.msra.mxu0 %vm1559_vm8, %v1705_v50 }
 0x44b   : > { %2197 = vmatprep.subr.mxu0 %v2310_v0  ;;  %v1695_v53 = vpop.permute.xlu1 %1694 }
 0x44d   : > { %v1689_v56 = vpop.permute.xlu0 %1688 }
 0x44e   : > { %2198 = vmatpush3.xpose.msk.msra.mxu0 %vm1559_vm8, %v1703_v39 }
 0x44f   : > { %2199 = vmatprep.subr.mxu0 %v2310_v0  ;;  %v1691_v55 = vpop.permute.xlu1 %1690 }
 0x451   : > { %v1685_v58 = vpop.permute.xlu0 %1684 }
 0x452   : > { %2200 = vmatpush3.xpose.msk.msra.mxu0 %vm1559_vm8, %v1701_v51 }
 0x453   : > { %2201 = vmatprep.subr.mxu0 %v2310_v0  ;;  %v1687_v57 = vpop.permute.xlu1 %1686 }
 0x456   : > { %2202 = vmatpush3.xpose.msk.msra.mxu0 %vm1559_vm8, %v1699_v37 }
 0x457   : > { %2203 = vmatprep.subr.mxu0 %v2310_v0 }
 0x45a   : > { %2204 = vmatpush3.xpose.msk.msra.mxu0 %vm1559_vm8, %v1697_v52 }
 0x45b   : > { %2205 = vmatprep.subr.mxu0 %v2310_v0 }
 0x45e   : > { %2206 = vmatpush3.xpose.msk.msra.mxu0 %vm1559_vm8, %v1695_v53 }
 0x45f   : > { %2207 = vmatprep.subr.mxu0 %v2310_v0 }
 0x460   : > { %v1557_v59 = vpop.permute.xlu1 %1556 }
 0x462   : > { %2208 = vmatpush3.xpose.msk.msra.mxu0 %vm1559_vm8, %v1693_v54 }
 0x463   : > { %2209 = vmatprep.subr.mxu0 %v2310_v0 }
 0x466   : > { %2210 = vmatpush3.xpose.msk.msra.mxu0 %vm1559_vm8, %v1691_v55 }
 0x467   : > { %2211 = vmatprep.subr.mxu0 %v2310_v0 }
 0x46a   : > { %2212 = vmatpush3.xpose.msk.msra.mxu0 %vm1559_vm8, %v1689_v56 }
 0x46b   : > { %2213 = vmatprep.subr.mxu0 %v2310_v0 }
 0x46e   : > { %2214 = vmatpush3.xpose.msk.msra.mxu0 %vm1559_vm8, %v1687_v57 }
 0x46f   : > { %2215 = vmatprep.subr.mxu0 %v2310_v0 }
 0x472   : > { %2216 = vmatpush3.xpose.msk.msra.mxu0 %vm1559_vm8, %v1685_v58 }
 0x475   : > { %2218 = vmatmul.mubr.msk.f32.vlgmr.msra.gmra.mxu0 %vm1559_vm8, %v1552_v43 }
 0x4c2   : > { %v1677_v60 = vpop.f32.mrf.mxu1 }
 0x4c3   : > { %v1678_v62 = vadd.f32 %v1677_v60, %v1557_v59 }
 0x4c4   : > { %v2184_v63 = vpop.f32.mrf.mxu1 }
 0x4c5   : > { %v1682_v1 = vadd.f32 %v1681_v61, %v1678_v62 }
 0x4c7   : > { %1683 = vst [vmem:[%s372_s19] sm:$0xf] %v1682_v1 }
 0x4ce   : > { %v1994_v2 = vld [vmem:[%s357_s16 + $0x4] sm:$0xf] }
 0x535   : > { %v1814_v0 = vpop.f32.mrf.mxu0 }
 0x536   : > { %v1815_v3 = vadd.f32 %v1814_v0, %v1557_v59 }
 0x537   : > { %v2219_v4 = vpop.f32.mrf.mxu0 }
 0x538   : > { %v1820_v5 = vadd.f32 %v1994_v2, %v1815_v3 }
 0x53a   : > { %1995 = vst [vmem:[%s372_s19 + $0x4] sm:$0xf] %v1820_v5 }
 0x53b PF: > { %s19_s30 = sadd.s32 1, %s2308_s30  }
 0x53c   : > { %p16_p4 = scmp.ge.s32.totalorder %s19_s30, 4  }
 0x53e   :  { %18 = sbr.rel (!%p16_p4) target bundleno = 1 (0x1), region = 94 }

</bundles_post_ra>
